<compile_context>
chip_gen: v7x
topology: tpu7x:2x2x1
jax: 0.10.0
libtpu: 0.0.40
codegen_flags: <defaults>
</compile_context>

<pallas_src>
import jax
import jax.numpy as jnp
from jax.experimental import pallas as pl
from jax.experimental.pallas import tpu as pltpu

PROJECTION_SIZE = 250


def _round_up(n, m):
    return ((n + m - 1) // m) * m


def _pad_to(a, shape, dtype=None, constant_values=0):
    """Cast (optional) + pad to `shape`; skips the pad when already aligned."""
    if dtype is not None and a.dtype != dtype:
        a = a.astype(dtype)
    pads = tuple((0, t - s) for s, t in zip(a.shape, shape))
    if any(p[1] for p in pads):
        a = jnp.pad(a, pads, constant_values=constant_values)
    return a


# ---------------------------------------------------------------------------
# Kernel 1: y_key projection   out = relu(rows @ W + b)   (bf16 in/out)
# ---------------------------------------------------------------------------
def _proj_kernel(rows_ref, w_ref, b_ref, o_ref):
    acc = jnp.dot(rows_ref[...], w_ref[...],
                  preferred_element_type=jnp.float32) + b_ref[...]
    o_ref[...] = jnp.maximum(acc, 0.0).astype(o_ref.dtype)


def _project(rows, w, bias2, *, tm):
    """rows:(R,Hp) bf16, w:(Hp,Op) bf16, bias2:(1,Op) f32 -> (R,Op) bf16."""
    R, Hp = rows.shape
    Op = w.shape[1]
    TM = min(_round_up(R, 16), tm)          # 16-row multiples: bf16 packing
    Rp = _round_up(R, TM)
    rows_p = _pad_to(rows, (Rp, Hp))
    out = pl.pallas_call(
        _proj_kernel,
        out_shape=jax.ShapeDtypeStruct((Rp, Op), jnp.bfloat16),
        grid_spec=pltpu.PrefetchScalarGridSpec(
            num_scalar_prefetch=0,
            grid=(Rp // TM,),
            in_specs=[
                pl.BlockSpec((TM, Hp), lambda i: (i, 0)),
                pl.BlockSpec((Hp, Op), lambda i: (0, 0)),
                pl.BlockSpec((1, Op), lambda i: (0, 0)),
            ],
            out_specs=pl.BlockSpec((TM, Op), lambda i: (i, 0)),
        ),
        compiler_params=pltpu.CompilerParams(
            dimension_semantics=("parallel",)),
    )(rows_p, w, bias2)
    return out[:R] if Rp != R else out


# ---------------------------------------------------------------------------
# Kernel 2: fused x-projection + flash-style attention
#   grid = (B, L1 tiles, L2 tiles);  L2 (reduction) axis last / "arbitrary".
# ---------------------------------------------------------------------------
def _attn_kernel(x_ref, w_ref, b_ref, yp_ref, yv_ref, madd_ref, o_ref,
                 xp_sc, m_sc, l_sc, acc_sc):
    j = pl.program_id(2)

    @pl.when(j == 0)
    def _():
        # Fused x projection: relu(x_tile @ W + b), computed once per (b, i)
        # tile and cached in VMEM (re-used across all j / key tiles).
        xp = jnp.dot(x_ref[0], w_ref[...],
                     preferred_element_type=jnp.float32) + b_ref[...]
        xp_sc[...] = jnp.maximum(xp, 0.0).astype(xp_sc.dtype)
        m_sc[...] = jnp.full_like(m_sc, -jnp.inf)
        l_sc[...] = jnp.zeros_like(l_sc)
        acc_sc[...] = jnp.zeros_like(acc_sc)

    xp = xp_sc[...]                                   # (TL1, Op) bf16
    yp = yp_ref[0]                                    # (TL2, Op) bf16
    # Contract the last dims directly (MXU 'nt' matmul; no XLU transpose /
    # VMEM copy of the y_proj tile).
    s = jax.lax.dot_general(
        xp, yp, (((1,), (1,)), ((), ())),
        preferred_element_type=jnp.float32)           # (TL1, TL2) f32
    s = s + madd_ref[0]                               # additive mask (1, TL2)

    m_prev = m_sc[...]
    m_new = jnp.maximum(m_prev, jnp.max(s, axis=-1, keepdims=True))
    a = jnp.exp(m_prev - m_new)
    p = jnp.exp(s - m_new)                            # (TL1, TL2) f32
    l_sc[...] = a * l_sc[...] + jnp.sum(p, axis=-1, keepdims=True)
    acc_sc[...] = a * acc_sc[...] + jnp.dot(
        p.astype(jnp.bfloat16), yv_ref[0],
        preferred_element_type=jnp.float32)           # (TL1, Hp)
    m_sc[...] = m_new

    @pl.when(j == pl.num_programs(2) - 1)
    def _():
        inv_l = pl.reciprocal(l_sc[...], approx=True)     # EUP slot, ~free
        o_ref[0] = (acc_sc[...] * inv_l).astype(o_ref.dtype)


def seq_attn_match_key_value(x, y_key, y_value, y_mask, w, bias,
                             *, tl1=512, tl2=256, tm_proj=1024):
    """x:(B,L1,H)  y_key/y_value:(B,L2,H)  y_mask:(B,L2) int  w:(H,O)  bias:(O,)."""
    B, L1, H = x.shape
    L2 = y_key.shape[1]
    O = w.shape[1]
    f32 = jnp.float32
    bf16 = jnp.bfloat16

    # Lane-dense padding (last dims -> multiples of 128); 16-row tiles (bf16).
    Hp = _round_up(H, 128)
    Op = _round_up(O, 128)
    TL1 = min(_round_up(L1, 16), tl1)
    TL2 = min(_round_up(L2, 16), tl2)
    L1p = _round_up(L1, TL1)
    L2p = _round_up(L2, TL2)

    # v7x megacore: keep at least 2 parallel (b, i) programs when possible.
    if B * (L1p // TL1) < 2 and L1 > 16:
        TL1 = _round_up(-(-L1 // 2), 16)
        L1p = _round_up(L1, TL1)

    # Cast-to-bf16 fused with padding (single wrapper pass per operand).
    x_p = _pad_to(x, (B, L1p, Hp), dtype=bf16)
    yk_p = _pad_to(y_key, (B, L2p, Hp), dtype=bf16)
    yv_p = _pad_to(y_value, (B, L2p, Hp), dtype=bf16)
    w_p = _pad_to(w, (Hp, Op), dtype=bf16)
    b_p = _pad_to(bias.reshape(1, O), (1, Op), dtype=f32)

    # Additive mask; padded key positions count as padding.  Finite -1e30
    # (not -inf) so fully padded rows stay NaN-free (uniform over y_value,
    # matching the bf16 reference below; strict -inf semantics would NaN).
    mask_p = _pad_to(y_mask.astype(jnp.int32), (B, L2p), constant_values=1)
    mask_add = jnp.where(mask_p > 0, jnp.float32(-1e30),
                         jnp.float32(0.0)).reshape(B, 1, L2p)

    # y_key projection as one big-M pre-pass (MXU-friendly M = B*L2p rows).
    y_proj = _project(yk_p.reshape(B * L2p, Hp), w_p, b_p,
                      tm=tm_proj).reshape(B, L2p, Op)

    grid = (B, L1p // TL1, L2p // TL2)
    out_p = pl.pallas_call(
        _attn_kernel,
        out_shape=jax.ShapeDtypeStruct((B, L1p, Hp), f32),
        grid_spec=pltpu.PrefetchScalarGridSpec(
            num_scalar_prefetch=0,
            grid=grid,
            in_specs=[
                pl.BlockSpec((1, TL1, Hp), lambda b, i, j: (b, i, 0)),  # x (raw)
                pl.BlockSpec((Hp, Op), lambda b, i, j: (0, 0)),         # W (resident)
                pl.BlockSpec((1, Op), lambda b, i, j: (0, 0)),          # bias
                pl.BlockSpec((1, TL2, Op), lambda b, i, j: (b, j, 0)),  # y_proj
                pl.BlockSpec((1, TL2, Hp), lambda b, i, j: (b, j, 0)),  # y_value
                pl.BlockSpec((1, 1, TL2), lambda b, i, j: (b, 0, j)),   # add-mask
            ],
            out_specs=pl.BlockSpec((1, TL1, Hp), lambda b, i, j: (b, i, 0)),
            scratch_shapes=[
                pltpu.VMEM((TL1, Op), bf16),   # cached x_proj tile
                pltpu.VMEM((TL1, 1), f32),     # running max
                pltpu.VMEM((TL1, 1), f32),     # running denominator
                pltpu.VMEM((TL1, Hp), f32),    # running numerator
            ],
        ),
        compiler_params=pltpu.CompilerParams(
            dimension_semantics=("parallel", "parallel", "arbitrary")),
    )(x_p, w_p, b_p, y_proj, yv_p, mask_add)

    if L1p == L1 and Hp == H:
        return out_p
    return out_p[:, :L1, :H]


# ---------------------------------------------------------------------------
# Reference (pure JAX) emulating the kernel's bf16-operand / f32-accumulate
# matmuls so tolerances stay tight.
# ---------------------------------------------------------------------------
def _reference_bf16(x, y_key, y_value, y_mask, w, bias):
    f32 = jnp.float32
    bf = lambda a: a.astype(jnp.bfloat16)
    xp = jax.nn.relu(jnp.einsum("blh,ho->blo", bf(x), bf(w),
                                preferred_element_type=f32) + bias)
    yp = jax.nn.relu(jnp.einsum("blh,ho->blo", bf(y_key), bf(w),
                                preferred_element_type=f32) + bias)
    scores = jnp.einsum("bio,bjo->bij", bf(xp), bf(yp),
                        preferred_element_type=f32)
    scores = scores + jnp.where(y_mask[:, None, :] > 0,
                                jnp.float32(-1e30), jnp.float32(0.0))
    alpha = jax.nn.softmax(scores, axis=-1)
    return jnp.einsum("bij,bjh->bih", bf(alpha), bf(y_value),
                      preferred_element_type=f32)


if __name__ == "__main__":
    # Small shapes consistent with the module: batch=2, len1=8, len2=8, hidden=32.
    B, L1, L2, H = 2, 8, 8, 32
    O = min(H, PROJECTION_SIZE)   # output_size = min(input_size, 250)

    key = jax.random.PRNGKey(0)
    kx, kyk, kyv, kw, kb = jax.random.split(key, 5)

    x = jax.random.normal(kx, (B, L1, H), dtype=jnp.float32)
    y_key = jax.random.normal(kyk, (B, L2, H), dtype=jnp.float32)
    y_value = jax.random.normal(kyv, (B, L2, H), dtype=jnp.float32)

    # Linear params (shapes from nn.Linear(input_size, output_size), W transposed).
    bound = 1.0 / (H ** 0.5)
    w = jax.random.uniform(kw, (H, O), minval=-bound, maxval=bound, dtype=jnp.float32)
    bias = jax.random.uniform(kb, (O,), minval=-bound, maxval=bound, dtype=jnp.float32)

    # Padding mask: last 2 positions of batch 0 and last 3 of batch 1 are padding.
    valid_lens = jnp.array([L2 - 2, L2 - 3], dtype=jnp.int32)
    y_mask = (jnp.arange(L2)[None, :] >= valid_lens[:, None]).astype(jnp.int32)

    out = seq_attn_match_key_value(x, y_key, y_value, y_mask, w, bias)
    out = jax.block_until_ready(out)

    ref = _reference_bf16(x, y_key, y_value, y_mask, w, bias)
    assert out.shape == (B, L1, H)
    assert bool(jnp.all(jnp.isfinite(out))), "non-finite output"
    # bf16 MXU operands -> compare against a bf16-emulating reference.
    assert jnp.allclose(out, ref, atol=2e-2, rtol=2e-2), "mismatch vs reference"

    print("KERNEL_OK")
</pallas_src>

<mosaic_0001>
module attributes {stable_mosaic.version = 11 : i64} {
  func.func @_proj_kernel(%arg0: i32, %arg1: memref<32x128xbf16, #tpu.memory_space<vmem>>, %arg2: memref<128x128xbf16, #tpu.memory_space<vmem>>, %arg3: memref<1x128xf32, #tpu.memory_space<vmem>>, %arg4: memref<32x128xbf16, #tpu.memory_space<vmem>>) attributes {dimension_semantics = [#tpu.dimension_semantics<parallel>], iteration_bounds = array<i64: 1>, scalar_prefetch = 0 : i64, scratch_operands = 0 : i64, tpu.core_type = #tpu.core_type<tc>, window_params = [{transform_indices = @transform_0, window_bounds = array<i64: 32, 128>}, {pipeline_mode = #tpu.pipeline_mode<synchronous>, transform_indices = @transform_1, window_bounds = array<i64: 128, 128>}, {pipeline_mode = #tpu.pipeline_mode<synchronous>, transform_indices = @transform_2, window_bounds = array<i64: 1, 128>}, {transform_indices = @transform_3, window_bounds = array<i64: 32, 128>}]} {
    %c0 = arith.constant 0 : index
    %c0_0 = arith.constant 0 : index
    %0 = vector.load %arg1[%c0, %c0_0] : memref<32x128xbf16, #tpu.memory_space<vmem>>, vector<32x128xbf16>
    %c0_1 = arith.constant 0 : index
    %c0_2 = arith.constant 0 : index
    %1 = vector.load %arg2[%c0_1, %c0_2] : memref<128x128xbf16, #tpu.memory_space<vmem>>, vector<128x128xbf16>
    %cst = arith.constant dense<0.000000e+00> : vector<32x128xf32>
    %2 = tpu.matmul %0, %1, %cst {dimension_numbers = #tpu.dot_dimension_numbers<[1], [0], [0], [1], [0, 0, 1, 1], [], []>} : vector<32x128xbf16>, vector<128x128xbf16>, vector<32x128xf32> -> vector<32x128xf32>
    %c0_3 = arith.constant 0 : index
    %c0_4 = arith.constant 0 : index
    %3 = vector.load %arg3[%c0_3, %c0_4] : memref<1x128xf32, #tpu.memory_space<vmem>>, vector<1x128xf32>
    %4 = vector.broadcast %3 : vector<1x128xf32> to vector<32x128xf32>
    %5 = arith.addf %2, %4 : vector<32x128xf32>
    %cst_5 = arith.constant 0.000000e+00 : f32
    %6 = vector.broadcast %cst_5 : f32 to vector<32x128xf32>
    %7 = arith.maximumf %5, %6 : vector<32x128xf32>
    %8 = arith.truncf %7 : vector<32x128xf32> to vector<32x128xbf16>
    %c0_6 = arith.constant 0 : index
    %c0_7 = arith.constant 0 : index
    %9 = vector.load %arg4[%c0_6, %c0_7] : memref<32x128xbf16, #tpu.memory_space<vmem>>, vector<32x128xbf16>
    tpu.vector_store %arg4[%c0_6, %c0_7], %8 {strides = array<i32>} : memref<32x128xbf16, #tpu.memory_space<vmem>>, vector<32x128xbf16>,
    return
  }
  func.func @transform_0(%arg0: i32) -> (i32, i32) {
    %c0_i32 = arith.constant 0 : i32
    %c0_i32_0 = arith.constant 0 : i32
    return %arg0, %c0_i32 : i32, i32
  }
  func.func @transform_1(%arg0: i32) -> (i32, i32) {
    %c0_i32 = arith.constant 0 : i32
    %c0_i32_0 = arith.constant 0 : i32
    %c0_i32_1 = arith.constant 0 : i32
    return %c0_i32, %c0_i32_0 : i32, i32
  }
  func.func @transform_2(%arg0: i32) -> (i32, i32) {
    %c0_i32 = arith.constant 0 : i32
    %c0_i32_0 = arith.constant 0 : i32
    %c0_i32_1 = arith.constant 0 : i32
    return %c0_i32, %c0_i32_0 : i32, i32
  }
  func.func @transform_3(%arg0: i32) -> (i32, i32) {
    %c0_i32 = arith.constant 0 : i32
    %c0_i32_0 = arith.constant 0 : i32
    return %arg0, %c0_i32 : i32, i32
  }
}

</mosaic_0001>

<bundles_post_ra>
// kernel: tpu_custom_call.1
= control target key start
LH: loop header
LB: loop body
LE: loop exit
PB: predicated region body
PF: predicated region fallthrough
CT: control target
= control target key end

     0   :  { %8 = vsyncpa [#allocation3], 0  ;;  %s442_s0 = inlined_call_operand.hbm [shape: bf16[32,128], index: 0, kind: input, shape index: {}]   ;;  %s443_s1 = inlined_call_operand.hbm [shape: bf16[128,128], index: 1, kind: input, shape index: {}]   ;;  %s444_s2 = inlined_call_operand.vmem [shape: f32[1,128], index: 2, kind: input, shape index: {}]   ;;  %s445_s3 = inlined_call_operand.hbm [shape: bf16[32,128], index: 3, kind: output, shape index: {}]  }
   0x1   :  { %9 = vsyncpa [#allocation6], 0 }
   0x2   :  { %10 = vsyncpa [#allocation4], 0  ;;  %s369_s12 = smov [#allocation2]   ;;  %s297_s16 = scalar_lea.hbm %s442_s0, 256 }
   0x3   :  { %s16_s13 = sshll.u32 %s369_s12, 4  ;;  %p298_p0 = scmp.ne.s32.totalorder %s442_s0, %s297_s16  ;;  %s17_s13 = int_to_ptr.vmem [resolvable:$true] %s16_s13 }
   0x4   :  { %p301_p1 = scmp.lt.u32.totalorder %s297_s16, %s442_s0 }
   0x6   :  { %p303_p2 = pnand %p301_p1, %p298_p0 }
   0x8   :  { %306 = shalt.err (!%p303_p2)
}
   0x9   :  { %s307_s21 = scalar_lea.vmem %s17_s13, 256  ;;  %p312_p4 = scmp.lt.s32.totalorder %s17_s13, %s17_s13 }
   0xa   :  { %p308_p3 = scmp.ne.s32.totalorder %s17_s13, %s307_s21  ;;  %p313_p5 = scmp.lt.s32.totalorder %s307_s21, %s307_s21 }
   0xc   :  { %p314_p6 = por %p313_p5, %p312_p4 }
   0xe   :  { %p315_p7 = pnand %p314_p6, %p308_p3 }
  0x10   :  { %318 = shalt.err (!%p315_p7)
}
  0x11   :  { %s370_s22 = smov 64   ;;  %s371_s23 = smov 4  }
  0x12   :  { %22 = dma.hbm_to_vmem [thread:$0]  %s442_s0, 256, %s17_s13, [#allocation3], %s370_s22, %s370_s22, %s371_s23  }
  0x13   :  { %s372_s26 = smov [#allocation5]   ;;  %s319_s30 = scalar_lea.hbm %s443_s1, 1024 }
  0x14   :  { %s28_s27 = sshll.u32 %s372_s26, 4  ;;  %p320_p8 = scmp.ne.s32.totalorder %s443_s1, %s319_s30  ;;  %s29_s27 = int_to_ptr.vmem [resolvable:$true] %s28_s27 }
  0x15   :  { %p323_p9 = scmp.lt.u32.totalorder %s319_s30, %s443_s1 }
  0x17   :  { %p325_p10 = pnand %p323_p9, %p320_p8 }
  0x19   :  { %328 = shalt.err (!%p325_p10)
}
  0x1a   :  { %s329_s8 = scalar_lea.vmem %s29_s27, 1024  ;;  %p334_p12 = scmp.lt.s32.totalorder %s29_s27, %s29_s27 }
  0x1b   :  { %p330_p11 = scmp.ne.s32.totalorder %s29_s27, %s329_s8  ;;  %p335_p13 = scmp.lt.s32.totalorder %s329_s8, %s329_s8 }
  0x1d   :  { %p336_p0 = por %p335_p13, %p334_p12 }
  0x1f   :  { %p337_p1 = pnand %p336_p0, %p330_p11 }
  0x21   :  { %340 = shalt.err (!%p337_p1)
}
  0x22   :  { %34 = dma.hbm_to_vmem [thread:$0]  %s443_s1, 1024, %s29_s27, [#allocation6], %s370_s22, %s370_s22, %s371_s23  }
  0x23   :  { %363 = dma.done.wait [#allocation3], 256  }
  0x24   :  { %364 = vsyncadd [#allocation3], 4294967040 }
  0x25   :  { %365 = dma.done.wait [#allocation6], 1024  }
  0x26   :  { %366 = vsyncadd [#allocation6], 4294966272  ;;  %v287_v0 = vld [vmem:[#allocation5] sm:$0xff]   ;;  %v288_v1 = vld [vmem:[#allocation5 + $0x8] sm:$0xff]   ;;  %s373_s11 = smov [#allocation7]  }
  0x27   :  { %262 = vmatprep.subr.bf16.mxu0 %v287_v0  ;;  %v289_v2 = vld [vmem:[#allocation5 + $0x10] sm:$0xff]   ;;  %v290_v3 = vld [vmem:[#allocation5 + $0x18] sm:$0xff]   ;;  %v291_v5 = vld [vmem:[#allocation5 + $0x20] sm:$0xff]   ;;  %s209_s12 = sshll.u32 %s373_s11, 4  ;;  %s210_s12 = int_to_ptr.vmem [resolvable:$true] %s209_s12 }
  0x28   :  { %263 = vmatpush3.bf16.msra.mxu0 %v287_v0  ;;  %v295_v4 = vld [vmem:[#allocation2] sm:$0xff]   ;;  %v292_v6 = vld [vmem:[#allocation5 + $0x28] sm:$0xff]   ;;  %v294_v8 = vld [vmem:[#allocation5 + $0x38] sm:$0xff]   ;;  %p346_p3 = scmp.lt.s32.totalorder %s210_s12, %s210_s12 }
  0x29   :  { %264 = vmatprep.subr.bf16.mxu0 %v288_v1  ;;  %278 = vmatprep.mubr.bf16.mxu0 %v295_v4  ;;  %v293_v7 = vld [vmem:[#allocation5 + $0x30] sm:$0xff]   ;;  %v296_v9 = vld [vmem:[#allocation2 + $0x8] sm:$0xff]  }
  0x2a   :  { %v222_v10 = vld [vmem:[%s444_s2] ss:$0 sm:$0xff]  ;;  %s341_s2 = scalar_lea.vmem %s210_s12, 256 }
  0x2b   :  { %p342_p2 = scmp.ne.s32.totalorder %s210_s12, %s341_s2  ;;  %p347_p4 = scmp.lt.s32.totalorder %s341_s2, %s341_s2 }
  0x2c   :  { %265 = vmatpush3.bf16.msra.mxu0 %v288_v1 }
  0x2d   :  { %266 = vmatprep.subr.bf16.mxu0 %v289_v2  ;;  %p348_p5 = por %p347_p4, %p346_p3 }
  0x2f   :  { %p349_p6 = pnand %p348_p5, %p342_p2 }
  0x30   :  { %267 = vmatpush3.bf16.msra.mxu0 %v289_v2 }
  0x31   :  { %268 = vmatprep.subr.bf16.mxu0 %v290_v3 }
  0x34   :  { %269 = vmatpush3.bf16.msra.mxu0 %v290_v3 }
  0x35   :  { %270 = vmatprep.subr.bf16.mxu0 %v291_v5 }
  0x38   :  { %271 = vmatpush3.bf16.msra.mxu0 %v291_v5 }
  0x39   :  { %272 = vmatprep.subr.bf16.mxu0 %v292_v6 }
  0x3c   :  { %273 = vmatpush3.bf16.msra.mxu0 %v292_v6 }
  0x3d   :  { %274 = vmatprep.subr.bf16.mxu0 %v293_v7 }
  0x40   :  { %275 = vmatpush3.bf16.msra.mxu0 %v293_v7 }
  0x41   :  { %276 = vmatprep.subr.bf16.mxu0 %v294_v8 }
  0x44   :  { %277 = vmatpush3.bf16.msra.mxu0 %v294_v8 }
  0x47   :  { %279 = vmatmul.mubr.bf16.vlgmr.msra.gmra.mrb[0].mxu0 %v296_v9 }
 0x11a   :  { %v280_v11 = vpop.f32.mrb[0].mxu0 }
 0x11b   :  { %v174_v12 = vadd.f32 %v280_v11, %v222_v10  ;;  %v165_v13 = vpop.f32.mrb[1].mxu0 }
 0x11c   :  { %v166_v14 = vadd.f32 %v222_v10, %v165_v13  ;;  %v281_v15 = vpop.f32.mrb[2].mxu0 }
 0x11d   :  { %v177_v16 = vadd.f32 %v281_v15, %v222_v10  ;;  %v168_v17 = vpop.f32.mrb[3].mxu0  ;;  %v182_v19 = vmax.f32 %v174_v12, 0.0 }
 0x11e   :  { %v169_v18 = vadd.f32 %v222_v10, %v168_v17  ;;  %v180_v21 = vmax.f32 %v166_v14, 0.0 }
 0x11f   :  { %v183_v20 = vmax.f32 %v177_v16, 0.0 }
 0x120   :  { %v181_v22 = vmax.f32 %v169_v18, 0.0 }
 0x121   :  { %v249_v23 = vpack.c.bf16 %v183_v20, %v182_v19 }
 0x122   :  { %v244_v24 = vpack.c.bf16 %v181_v22, %v180_v21 }
 0x123   :  { %251 = vst [vmem:[#allocation7 + $0x8] sm:$0xff] %v249_v23  }
 0x124   :  { %245 = vst [vmem:[#allocation7] sm:$0xff] %v244_v24  }
 0x125   :  { %352 = shalt.err (!%p349_p6)
}
 0x126   :  { %s353_s15 = scalar_lea.hbm %s445_s3, 256 }
 0x127   :  { %p354_p7 = scmp.ne.s32.totalorder %s445_s3, %s353_s15  ;;  %p357_p8 = scmp.lt.u32.totalorder %s353_s15, %s445_s3 }
 0x129   :  { %p359_p9 = pnand %p357_p8, %p354_p7 }
 0x12b   :  { %362 = shalt.err (!%p359_p9)
}
 0x12c   :  { %215 = dma.vmem_to_hbm [thread:$0]  %s210_s12, 256, %s445_s3, [#allocation4], %s370_s22, %s370_s22, %s371_s23  }
 0x12d   :  { %367 = dma.done.wait [#allocation4], 256  }
 0x12e   :  { %368 = vsyncadd [#allocation4], 4294967040 }
 0x12f   :  { %219 = vsyncpa [#allocation3], 1 }
 0x130   :  { %220 = vsyncpa [#allocation6], 1 }
 0x131   :  { %221 = vsyncpa [#allocation4], 1 }

</bundles_post_ra>
